<compile_context>
chip_gen: v7x
topology: tpu7x:2x2x1
jax: 0.10.0
libtpu: 0.0.40
codegen_flags: <defaults>
</compile_context>

<pallas_src>
import jax
import jax.numpy as jnp
from jax.experimental import pallas as pl
from jax.experimental.pallas import tpu as pltpu

PATCH_SIZE = 14
TEMPORAL_PATCH_SIZE = 2
MERGE_SIZE = 2
PAD_TOKEN_ID = 0

# CLIP / Qwen2-VL processor constants (the module's only "parameters").
IMAGE_MEAN = (0.48145466, 0.4578275, 0.40821073)
IMAGE_STD = (0.26862954, 0.26130258, 0.27577711)


# ---------------------------------------------------------------------------
# Kernel 1: fused uint8 -> f32 cast + per-row affine  y = x * scale + bias
# Rows = (image, channel) pairs; lanes = tiles of H*W.
# ---------------------------------------------------------------------------
def _normalize_u8_kernel(scale_ref, bias_ref, x_ref, o_ref):
    x = x_ref[...].astype(jnp.float32)                 # uint8 -> f32 in VMEM
    o_ref[...] = x * scale_ref[...] + bias_ref[...]    # (tile_r,1) lane-broadcast


def _normalize_tiles(r, d, target_block_bytes):
    """Bound BOTH block axes: rows (multiple of 32 for the 8-bit input tiling,
    or the full extent) and lanes (multiple of 128, or the full extent)."""
    elems = max(1, target_block_bytes // 4)            # f32 elements per out block
    if r * 128 <= elems:
        tile_r = r                                     # full row extent (always legal)
    else:
        tile_r = max(32, (elems // 128 // 32) * 32)
        tile_r = min(tile_r, r)
    tile_d = max(128, (elems // tile_r // 128) * 128)
    if tile_d >= d:
        tile_d = d                                     # full lane extent (always legal)
    return tile_r, tile_d


def normalize_images_u8(images_u8, mean, std, *, target_block_bytes=2 * 1024 * 1024):
    """images_u8: uint8 [N, C, H, W] in [0, 255]. Returns normalized float32 NCHW.

    y = (x/255 - mean)/std  ==  x * (1/(255*std)) + (-mean/std)
    target_block_bytes: ~2 MiB default (>=1 MiB tiles already reach ~85% of HBM
    roofline; keeps 2x double-buffered blocks well inside v7x's 64 MiB VMEM).
    """
    n, c, h, w = images_u8.shape
    r, d = n * c, h * w
    x2d = images_u8.reshape(r, d)                               # free reshape

    scale = (1.0 / (255.0 * std)).astype(jnp.float32)           # (C,)
    bias = (-mean / std).astype(jnp.float32)                    # (C,)
    scale_col = jnp.tile(scale, n).reshape(r, 1)                # row -> channel = row % C
    bias_col = jnp.tile(bias, n).reshape(r, 1)

    tile_r, tile_d = _normalize_tiles(r, d, target_block_bytes)
    grid = (pl.cdiv(r, tile_r), pl.cdiv(d, tile_d))

    y2d = pl.pallas_call(
        _normalize_u8_kernel,
        out_shape=jax.ShapeDtypeStruct((r, d), jnp.float32),
        grid=grid,
        in_specs=[
            pl.BlockSpec((tile_r, 1), lambda i, j: (i, 0)),      # scale (rows,1)
            pl.BlockSpec((tile_r, 1), lambda i, j: (i, 0)),      # bias  (rows,1)
            pl.BlockSpec((tile_r, tile_d), lambda i, j: (i, j)), # x (uint8)
        ],
        out_specs=pl.BlockSpec((tile_r, tile_d), lambda i, j: (i, j)),
        compiler_params=pltpu.CompilerParams(
            dimension_semantics=("parallel", "parallel"),
            vmem_limit_bytes=32 * 1024 * 1024),
    )(scale_col, bias_col, x2d)
    return y2d.reshape(n, c, h, w)


# ---------------------------------------------------------------------------
# Batched Qwen2-VL patchify.  Pure layout -> plain JAX, but the tps=2 temporal
# duplication is introduced AFTER the big transpose so XLA only pushes 1x the
# data through the layout-hostile transpose and writes the duplication last.
# ---------------------------------------------------------------------------
def qwen2vl_patchify_batched(img_norm):
    """img_norm: [N, C, H, W] normalized. Returns pixel_values [N*gh*gw, C*tps*p*p]."""
    n, c, h, w = img_norm.shape
    p, m, tps = PATCH_SIZE, MERGE_SIZE, TEMPORAL_PATCH_SIZE
    gh, gw = h // p, w // p
    ghm, gwm = gh // m, gw // m
    x = img_norm.reshape(n, c, ghm, m, p, gwm, m, p)       # (n,C,ghm,m1,ph,gwm,m2,pw)
    x = x.transpose(0, 2, 5, 3, 6, 1, 4, 7)                # (n,ghm,gwm,m1,m2,C,ph,pw)
    x = x.reshape(n * gh * gw, c, 1, p, p)
    x = jnp.broadcast_to(x, (n * gh * gw, c, tps, p, p))   # temporal copy added last
    return x.reshape(n * gh * gw, c * tps * p * p)


# ---------------------------------------------------------------------------
# Kernel 2: right-padding + attention mask (padding_side='right').
# Whole (B, L) in one block: the work is KBs, so avoid per-grid-step overhead.
# ---------------------------------------------------------------------------
def _pad_mask_kernel(ids_ref, lens_ref, ids_out_ref, mask_out_ref):
    ids = ids_ref[...]                                            # (B, L) int32
    pos = jax.lax.broadcasted_iota(jnp.int32, ids.shape, dimension=1)
    valid = pos < lens_ref[...]                                   # (B,1) lane-broadcast
    ids_out_ref[...] = jnp.where(valid, ids, jnp.int32(PAD_TOKEN_ID))
    mask_out_ref[...] = valid.astype(jnp.int32)


def pad_and_mask(token_ids, lengths):
    """token_ids: int32 [B, L] (fixed buffer), lengths: int32 [B].
    TODO(synk): HF padding='longest' would shrink L to max(lengths); dynamic
    output shapes are not expressible here, so the fixed buffer length is kept."""
    b, l = token_ids.shape
    lens2d = lengths.reshape(b, 1).astype(jnp.int32)
    return pl.pallas_call(
        _pad_mask_kernel,
        out_shape=(jax.ShapeDtypeStruct((b, l), jnp.int32),
                   jax.ShapeDtypeStruct((b, l), jnp.int32)),
        grid=(1,),
        in_specs=[
            pl.BlockSpec((b, l), lambda i: (0, 0)),
            pl.BlockSpec((b, 1), lambda i: (0, 0)),
        ],
        out_specs=(pl.BlockSpec((b, l), lambda i: (0, 0)),
                   pl.BlockSpec((b, l), lambda i: (0, 0))),
    )(token_ids, lens2d)


# ---------------------------------------------------------------------------
# LQ_Tokenizer.forward equivalent (numeric part)
# ---------------------------------------------------------------------------
def lq_tokenizer_forward(images_u8, token_ids, lengths):
    # TODO(synk): apply_chat_template / '<image>' expansion / subword tokenization
    # are string ops with no Pallas equivalent; token_ids are provided pre-tokenized.
    mean = jnp.asarray(IMAGE_MEAN, dtype=jnp.float32)
    std = jnp.asarray(IMAGE_STD, dtype=jnp.float32)

    n, _, h, w = images_u8.shape
    gh, gw = h // PATCH_SIZE, w // PATCH_SIZE

    # Processor hot path: uint8 -> f32 rescale + normalize (Pallas kernel).
    img_norm = normalize_images_u8(images_u8, mean, std)

    # Patchify the whole batch (layout only; temporal duplication last).
    pixel_values = qwen2vl_patchify_batched(img_norm)

    grid_thw = jnp.tile(jnp.array([[1, gh, gw]], dtype=jnp.int32), (n, 1))

    # image_token_num = grid_h*grid_w//4 per image: only consumed by the string-level
    # '<image>' expansion and then popped by the module, so compute statically.
    image_token_num = [gh * gw // 4] * n
    del image_token_num  # TODO(synk): feed into expand_images_in_multiple_messages

    # Tokenizer padding hot path (Pallas kernel).
    input_ids, attention_mask = pad_and_mask(token_ids, lengths)

    return {
        "pixel_values": pixel_values,
        "grid_thw": grid_thw,
        "input_ids": input_ids,
        "attention_mask": attention_mask,
    }


if __name__ == "__main__":
    key = jax.random.PRNGKey(0)
    k_img, k_ids = jax.random.split(key)

    N_IMG, C, H, W = 2, 3, 56, 56          # grid_h = grid_w = 4 -> 4 merged tokens/img
    B, L = 2, 128

    images_u8 = jax.random.randint(k_img, (N_IMG, C, H, W), 0, 256,
                                   dtype=jnp.int32).astype(jnp.uint8)
    token_ids = jax.random.randint(k_ids, (B, L), 1, 32000, dtype=jnp.int32)
    lengths = jnp.array([37, 53], dtype=jnp.int32)

    # --- pure-JAX references (computed up front) -----------------------------
    mean_r = jnp.asarray(IMAGE_MEAN, jnp.float32).reshape(1, 3, 1, 1)
    std_r = jnp.asarray(IMAGE_STD, jnp.float32).reshape(1, 3, 1, 1)
    ref_norm = (images_u8.astype(jnp.float32) / 255.0 - mean_r) / std_r

    def patchify_single(x):  # mirrors the original per-image processor path
        c, h, w = x.shape
        gh, gw = h // PATCH_SIZE, w // PATCH_SIZE
        ghm, gwm = gh // MERGE_SIZE, gw // MERGE_SIZE
        pt = jnp.tile(x[None], (TEMPORAL_PATCH_SIZE, 1, 1, 1))
        pt = pt.reshape(1, TEMPORAL_PATCH_SIZE, c, ghm, MERGE_SIZE, PATCH_SIZE,
                        gwm, MERGE_SIZE, PATCH_SIZE)
        pt = pt.transpose(0, 3, 6, 4, 7, 2, 1, 5, 8)
        return pt.reshape(gh * gw, c * TEMPORAL_PATCH_SIZE * PATCH_SIZE * PATCH_SIZE)

    ref_pv = jnp.concatenate([patchify_single(ref_norm[i]) for i in range(N_IMG)], 0)
    ref_mask = (jnp.arange(L)[None, :] < lengths[:, None]).astype(jnp.int32)
    ref_ids = jnp.where(ref_mask == 1, token_ids, PAD_TOKEN_ID)

    # --- run the Pallas forward ----------------------------------------------
    forward = jax.jit(lq_tokenizer_forward)
    out = forward(images_u8, token_ids, lengths)
    jax.block_until_ready(out)

    assert out["pixel_values"].shape == (N_IMG * 16, 3 * 2 * 14 * 14)
    assert out["pixel_values"].dtype == jnp.float32
    assert jnp.allclose(out["pixel_values"], ref_pv, atol=1e-5)
    assert out["grid_thw"].shape == (N_IMG, 3)
    assert jnp.array_equal(out["grid_thw"],
                           jnp.tile(jnp.array([[1, 4, 4]], jnp.int32), (N_IMG, 1)))
    assert jnp.array_equal(out["attention_mask"], ref_mask)
    assert jnp.array_equal(out["input_ids"], ref_ids)

    print("KERNEL_OK")
</pallas_src>

<mosaic_0001>
module attributes {stable_mosaic.version = 11 : i64} {
  func.func @_pad_mask_kernel(%arg0: i32, %arg1: memref<2x128xi32, #tpu.memory_space<vmem>>, %arg2: memref<2x1xi32, #tpu.memory_space<vmem>>, %arg3: memref<2x128xi32, #tpu.memory_space<vmem>>, %arg4: memref<2x128xi32, #tpu.memory_space<vmem>>) attributes {dimension_semantics = [#tpu.dimension_semantics<arbitrary>], iteration_bounds = array<i64: 1>, scalar_prefetch = 0 : i64, scratch_operands = 0 : i64, tpu.core_type = #tpu.core_type<tc>, window_params = [{pipeline_mode = #tpu.pipeline_mode<synchronous>, transform_indices = @transform_0, window_bounds = array<i64: 2, 128>}, {pipeline_mode = #tpu.pipeline_mode<synchronous>, transform_indices = @transform_1, window_bounds = array<i64: 2, 1>}, {pipeline_mode = #tpu.pipeline_mode<synchronous>, transform_indices = @transform_2, window_bounds = array<i64: 2, 128>}, {pipeline_mode = #tpu.pipeline_mode<synchronous>, transform_indices = @transform_3, window_bounds = array<i64: 2, 128>}]} {
    %c0 = arith.constant 0 : index
    %c0_0 = arith.constant 0 : index
    %0 = vector.load %arg1[%c0, %c0_0] : memref<2x128xi32, #tpu.memory_space<vmem>>, vector<2x128xi32>
    %1 = tpu.iota {dimensions = array<i32: 1>} : vector<2x128xi32>
    %c0_1 = arith.constant 0 : index
    %c0_2 = arith.constant 0 : index
    %2 = vector.load %arg2[%c0_1, %c0_2] : memref<2x1xi32, #tpu.memory_space<vmem>>, vector<2x1xi32>
    %3 = vector.broadcast %2 : vector<2x1xi32> to vector<2x128xi32>
    %4 = arith.cmpi slt, %1, %3 : vector<2x128xi32>
    %c0_i32 = arith.constant 0 : i32
    %5 = vector.broadcast %c0_i32 : i32 to vector<2x128xi32>
    %6 = arith.select %4, %0, %5 : vector<2x128xi1>, vector<2x128xi32>
    %c0_3 = arith.constant 0 : index
    %c0_4 = arith.constant 0 : index
    %7 = vector.load %arg3[%c0_3, %c0_4] : memref<2x128xi32, #tpu.memory_space<vmem>>, vector<2x128xi32>
    tpu.vector_store %arg3[%c0_3, %c0_4], %6 {strides = array<i32>} : memref<2x128xi32, #tpu.memory_space<vmem>>, vector<2x128xi32>,
    %8 = arith.extui %4 : vector<2x128xi1> to vector<2x128xi32>
    %c0_5 = arith.constant 0 : index
    %c0_6 = arith.constant 0 : index
    %9 = vector.load %arg4[%c0_5, %c0_6] : memref<2x128xi32, #tpu.memory_space<vmem>>, vector<2x128xi32>
    tpu.vector_store %arg4[%c0_5, %c0_6], %8 {strides = array<i32>} : memref<2x128xi32, #tpu.memory_space<vmem>>, vector<2x128xi32>,
    return
  }
  func.func @transform_0(%arg0: i32) -> (i32, i32) {
    %c0_i32 = arith.constant 0 : i32
    %c0_i32_0 = arith.constant 0 : i32
    %c0_i32_1 = arith.constant 0 : i32
    return %c0_i32, %c0_i32_0 : i32, i32
  }
  func.func @transform_1(%arg0: i32) -> (i32, i32) {
    %c0_i32 = arith.constant 0 : i32
    %c0_i32_0 = arith.constant 0 : i32
    %c0_i32_1 = arith.constant 0 : i32
    return %c0_i32, %c0_i32_0 : i32, i32
  }
  func.func @transform_2(%arg0: i32) -> (i32, i32) {
    %c0_i32 = arith.constant 0 : i32
    %c0_i32_0 = arith.constant 0 : i32
    %c0_i32_1 = arith.constant 0 : i32
    return %c0_i32, %c0_i32_0 : i32, i32
  }
  func.func @transform_3(%arg0: i32) -> (i32, i32) {
    %c0_i32 = arith.constant 0 : i32
    %c0_i32_0 = arith.constant 0 : i32
    %c0_i32_1 = arith.constant 0 : i32
    return %c0_i32, %c0_i32_0 : i32, i32
  }
}

module attributes {stable_mosaic.version = 11 : i64} {
  func.func @_normalize_u8_kernel(%arg0: i32, %arg1: i32, %arg2: memref<6x1xf32, #tpu.memory_space<vmem>>, %arg3: memref<6x1xf32, #tpu.memory_space<vmem>>, %arg4: memref<6x3136xi8, #tpu.memory_space<vmem>>, %arg5: memref<6x3136xf32, #tpu.memory_space<vmem>>) attributes {dimension_semantics = [#tpu.dimension_semantics<parallel>, #tpu.dimension_semantics<parallel>], iteration_bounds = array<i64: 1, 1>, scalar_prefetch = 0 : i64, scratch_operands = 0 : i64, tpu.core_type = #tpu.core_type<tc>, window_params = [{transform_indices = @transform_0, window_bounds = array<i64: 6, 1>}, {transform_indices = @transform_1, window_bounds = array<i64: 6, 1>}, {transform_indices = @transform_2, window_bounds = array<i64: 6, 3136>}, {transform_indices = @transform_3, window_bounds = array<i64: 6, 3136>}]} {
    %c0 = arith.constant 0 : index
    %c0_0 = arith.constant 0 : index
    %0 = vector.load %arg4[%c0, %c0_0] : memref<6x3136xi8, #tpu.memory_space<vmem>>, vector<6x3136xi8>
    %1 = arith.uitofp %0 : vector<6x3136xi8> to vector<6x3136xf32>
    %c0_1 = arith.constant 0 : index
    %c0_2 = arith.constant 0 : index
    %2 = vector.load %arg2[%c0_1, %c0_2] : memref<6x1xf32, #tpu.memory_space<vmem>>, vector<6x1xf32>
    %3 = vector.broadcast %2 : vector<6x1xf32> to vector<6x3136xf32>
    %4 = arith.mulf %1, %3 : vector<6x3136xf32>
    %c0_3 = arith.constant 0 : index
    %c0_4 = arith.constant 0 : index
    %5 = vector.load %arg3[%c0_3, %c0_4] : memref<6x1xf32, #tpu.memory_space<vmem>>, vector<6x1xf32>
    %6 = vector.broadcast %5 : vector<6x1xf32> to vector<6x3136xf32>
    %7 = arith.addf %4, %6 : vector<6x3136xf32>
    %c0_5 = arith.constant 0 : index
    %c0_6 = arith.constant 0 : index
    %8 = vector.load %arg5[%c0_5, %c0_6] : memref<6x3136xf32, #tpu.memory_space<vmem>>, vector<6x3136xf32>
    tpu.vector_store %arg5[%c0_5, %c0_6], %7 {strides = array<i32>} : memref<6x3136xf32, #tpu.memory_space<vmem>>, vector<6x3136xf32>,
    return
  }
  func.func @transform_0(%arg0: i32, %arg1: i32) -> (i32, i32) {
    %c0_i32 = arith.constant 0 : i32
    %c0_i32_0 = arith.constant 0 : i32
    return %arg0, %c0_i32 : i32, i32
  }
  func.func @transform_1(%arg0: i32, %arg1: i32) -> (i32, i32) {
    %c0_i32 = arith.constant 0 : i32
    %c0_i32_0 = arith.constant 0 : i32
    return %arg0, %c0_i32 : i32, i32
  }
  func.func @transform_2(%arg0: i32, %arg1: i32) -> (i32, i32) {
    %c0_i32 = arith.constant 0 : i32
    return %arg0, %arg1 : i32, i32
  }
  func.func @transform_3(%arg0: i32, %arg1: i32) -> (i32, i32) {
    %c0_i32 = arith.constant 0 : i32
    return %arg0, %arg1 : i32, i32
  }
}

</mosaic_0001>

<bundles_post_ra>
// kernel: tile.14
= control target key start
LH: loop header
LB: loop body
LE: loop exit
PB: predicated region body
PF: predicated region fallthrough
CT: control target
= control target key end

     0   :  { %s22_s0 = inlined_call_operand.vmem [shape: f32[3], index: 0, kind: input, shape index: {}]   ;;  %s23_s1 = inlined_call_operand.vmem [shape: f32[2,3], index: 1, kind: output, shape index: {}]  }
   0x1   :  { %v4_v0 = vld [vmem:[%s22_s0] ss:$0 sm:$0xff] }
   0x2   :  { %5 = vst [vmem:[%s23_s1] sm:$0x3] %v4_v0 }

// kernel: tile.0
= control target key start
LH: loop header
LB: loop body
LE: loop exit
PB: predicated region body
PF: predicated region fallthrough
CT: control target
= control target key end

     0   :  { %vm7_vm0 = vcmask 7168   ;;  %s26_s10 = smov 126   ;;  %s49_s0 = inlined_call_operand.vmem [shape: f32[2,3], index: 0, kind: input, shape index: {}]   ;;  %s50_s1 = inlined_call_operand.vmem [shape: f32[6,1], index: 1, kind: output, shape index: {}]  }
   0x1   :  { %v4_v0 = vld [vmem:[%s49_s0] sm:$0x3]  ;;  %s25_s0 = smov 127  }
   0x2   :  { %5 = vst [vmem:[#allocation0] sm:$0x3] %v4_v0 }
   0x9   :  { %v9_v1 = vld [vmem:[#allocation0] sm:$0x3]  }
   0xa   :  { %v6_v2 = vld [vmem:[#allocation0] sm:$0x3]   ;;  %10 = vrot.lane.b32.xlu0 %v9_v1, %s25_s0 }
   0xb   :  { %8 = vst.msk [vmem:[%s50_s1] ss:$3 sm:$0x3] %vm7_vm0, %v6_v2   ;;  %v15_v3 = vld [vmem:[#allocation0] sm:$0x3]  }
   0xe   :  { %16 = vrot.lane.b32.xlu0 %v15_v3, %s26_s10 }
  0x7c   :  { %v11_v4 = vpop.permute.xlu0 %10  }
  0x7d   :  { %21 = vst.msk [vmem:[%s50_s1 + $0x1] ss:$3 sm:$0x3] %vm7_vm0, %v11_v4  }
  0x80   :  { %v17_v5 = vpop.permute.xlu0 %16  }
  0x81   :  { %22 = vst.msk [vmem:[%s50_s1 + $0x2] ss:$3 sm:$0x3] %vm7_vm0, %v17_v5  }

// kernel: lq_tokenizer_forward.3
= control target key start
LH: loop header
LB: loop body
LE: loop exit
PB: predicated region body
PF: predicated region fallthrough
CT: control target
= control target key end

     0   :  { %9 = vsyncpa [#allocation3], 0  ;;  %s160_s0 = inlined_call_operand.vmem [shape: s32[2,128], index: 0, kind: input, shape index: {}]   ;;  %s161_s1 = inlined_call_operand.vmem [shape: s32[2,1], index: 1, kind: input, shape index: {}]   ;;  %s162_s2 = inlined_call_operand.hbm [shape: s32[2,128], index: 2, kind: output, shape index: {0}]   ;;  %s163_s3 = inlined_call_operand.hbm [shape: s32[2,128], index: 3, kind: output, shape index: {1}]  }
   0x1   :  { %v18_v0 = vld [vmem:[%s161_s1] sm:$0x3] }
   0x2   :  { %10 = vsyncpa [#allocation5], 0  ;;  %v107_v1 = vmov 0   ;;  %v16_v2 = vlaneseq  ;;  %s108_s14 = smov [#allocation2]   ;;  %v15_v4 = vld [vmem:[%s160_s0] sm:$0x3] }
   0x3   :  { %58 = vset.pattern.permute.xlu0 %v107_v1  ;;  %s33_s15 = sshll.u32 %s108_s14, 4  ;;  %s109_s18 = smov [#allocation4]   ;;  %s34_s15 = int_to_ptr.vmem [resolvable:$true] %s33_s15 }
   0x4   :  { %20 = vperm.xlu0 %58, %v18_v0   ;;  %v17_v3 = vand.u32 127, %v16_v2  ;;  %s43_s19 = sshll.u32 %s109_s18, 4  ;;  %s59_s1 = scalar_lea.vmem %s34_s15, 32  ;;  %s44_s19 = int_to_ptr.vmem [resolvable:$true] %s43_s19 }
   0x5   :  { %p60_p0 = scmp.ne.s32.totalorder %s34_s15, %s59_s1  ;;  %p64_p1 = scmp.lt.s32.totalorder %s34_s15, %s34_s15 }
   0x6   :  { %p65_p2 = scmp.lt.s32.totalorder %s59_s1, %s59_s1 }
   0x8   :  { %p66_p3 = por %p65_p2, %p64_p1 }
   0xa   :  { %p67_p4 = pnand %p66_p3, %p60_p0 }
  0x83   :  { %v21_v5 = vpop.permute.xlu0 %20 }
  0x84   :  { %vm22_vm0 = vcmp.lt.s32.totalorder %v17_v3, %v21_v5 }
  0x85   :  { %v25_v6 = vsel %vm22_vm0, 1, %v107_v1  ;;  %v23_v7 = vsel %vm22_vm0, %v15_v4, 0 }
  0x86   :  { %26 = vst [vmem:[#allocation4] sm:$0x3] %v25_v6  ;;  %24 = vst [vmem:[#allocation2] sm:$0x3] %v23_v7 }
  0x87   :  { %70 = shalt.err (!%p67_p4)
}
  0x88   :  { %s71_s0 = scalar_lea.hbm %s162_s2, 32 }
  0x89   :  { %p72_p5 = scmp.ne.s32.totalorder %s162_s2, %s71_s0  ;;  %p75_p6 = scmp.lt.u32.totalorder %s71_s0, %s162_s2 }
  0x8b   :  { %p77_p7 = pnand %p75_p6, %p72_p5 }
  0x8d   :  { %80 = shalt.err (!%p77_p7)
}
  0x8e   :  { %36 = dma.vmem_to_hbm [thread:$0]  %s34_s15, 32, %s162_s2, [#allocation3]  }
  0x8f   :  { %s81_s28 = scalar_lea.vmem %s44_s19, 32  ;;  %p86_p9 = scmp.lt.s32.totalorder %s44_s19, %s44_s19 }
  0x90   :  { %p82_p8 = scmp.ne.s32.totalorder %s44_s19, %s81_s28  ;;  %p87_p10 = scmp.lt.s32.totalorder %s81_s28, %s81_s28 }
  0x92   :  { %p88_p11 = por %p87_p10, %p86_p9 }
  0x94   :  { %p89_p12 = pnand %p88_p11, %p82_p8 }
  0x96   :  { %92 = shalt.err (!%p89_p12)
}
  0x97   :  { %s93_s4 = scalar_lea.hbm %s163_s3, 32 }
  0x98   :  { %p94_p13 = scmp.ne.s32.totalorder %s163_s3, %s93_s4  ;;  %p97_p0 = scmp.lt.u32.totalorder %s93_s4, %s163_s3 }
  0x9a   :  { %p99_p1 = pnand %p97_p0, %p94_p13 }
  0x9c   :  { %102 = shalt.err (!%p99_p1)
}
  0x9d   :  { %46 = dma.vmem_to_hbm [thread:$0]  %s44_s19, 32, %s163_s3, [#allocation5]  }
  0x9e   :  { %103 = dma.done.wait [#allocation3], 32  }
  0x9f   :  { %104 = vsyncadd [#allocation3], 4294967264 }
  0xa0   :  { %105 = dma.done.wait [#allocation5], 32  }
  0xa1   :  { %106 = vsyncadd [#allocation5], 4294967264 }
  0xa2   :  { %53 = vsyncpa [#allocation3], 1 }
  0xa3   :  { %54 = vsyncpa [#allocation5], 1 }

// kernel: lq_tokenizer_forward.2
= control target key start
LH: loop header
LB: loop body
LE: loop exit
PB: predicated region body
PF: predicated region fallthrough
CT: control target
= control target key end

     0   :  { %v190_v0 = vmov 0   ;;  %vm182_vm0 = vcmask 521216   ;;  %s314_s0 = inlined_call_operand.vmem [shape: f32[6,1], index: 0, kind: input, shape index: {}]   ;;  %s315_s1 = inlined_call_operand.vmem [shape: f32[6,1], index: 1, kind: input, shape index: {}]   ;;  %s316_s2 = inlined_call_operand.vmem [shape: u8[6,3136], index: 2, kind: input, shape index: {}]   ;;  %s317_s3 = inlined_call_operand.vmem [shape: f32[6,3136], index: 3, kind: output, shape index: {}]  }
   0x1   :  { %189 = vset.pattern.permute.xlu0 %v190_v0  ;;  %v96_v1 = vld [vmem:[%s314_s0] sm:$0x3f]  ;;  %v15_v4 = vld [vmem:[%s316_s2 + $0x8] sm:$0xff]  ;;  %v16_v5 = vld [vmem:[%s316_s2 + $0x10] sm:$0xff] }
   0x2   :  { %99 = vperm.xlu0 %189, %v96_v1   ;;  %v127_v2 = vld [vmem:[%s315_s1] sm:$0x3f]  ;;  %v17_v6 = vld [vmem:[%s316_s2 + $0x18] sm:$0xff]  ;;  %v25_v12 = vunpack.c.0.s8 %v15_v4  ;;  %v26_v13 = vunpack.c.1.s8 %v15_v4  ;;  %v27_v14 = vunpack.c.2.s8 %v15_v4  ;;  %v19_v15 = vld [vmem:[%s316_s2 + $0x28] sm:$0xff]  ;;  %v28_v16 = vunpack.c.3.s8 %v15_v4 }
   0x3   :  { %v14_v3 = vld [vmem:[%s316_s2] sm:$0xff]  ;;  %v29_v17 = vunpack.c.0.s8 %v16_v5  ;;  %v30_v18 = vunpack.c.1.s8 %v16_v5  ;;  %v31_v19 = vunpack.c.2.s8 %v16_v5  ;;  %v20_v20 = vld [vmem:[%s316_s2 + $0x30] sm:$0x3]  ;;  %v32_v21 = vunpack.c.3.s8 %v16_v5 }
   0x4   :  { %v21_v7 = vunpack.c.0.s8 %v14_v3  ;;  %v22_v8 = vunpack.c.1.s8 %v14_v3  ;;  %v23_v9 = vunpack.c.2.s8 %v14_v3  ;;  %v18_v10 = vld [vmem:[%s316_s2 + $0x20] sm:$0xff]  ;;  %v24_v11 = vunpack.c.3.s8 %v14_v3 }
   0x5   :  { %v33_v22 = vunpack.c.0.s8 %v17_v6  ;;  %v34_v23 = vunpack.c.1.s8 %v17_v6  ;;  %v35_v24 = vunpack.c.2.s8 %v17_v6  ;;  %v36_v25 = vunpack.c.3.s8 %v17_v6 }
   0x6   :  { %130 = vperm.xlu0 %189, %v127_v2   ;;  %v37_v26 = vunpack.c.0.s8 %v18_v10  ;;  %v38_v27 = vunpack.c.1.s8 %v18_v10  ;;  %v39_v28 = vunpack.c.2.s8 %v18_v10  ;;  %v40_v29 = vunpack.c.3.s8 %v18_v10 }
   0x7   :  { %v41_v30 = vunpack.c.0.s8 %v19_v15  ;;  %v42_v31 = vunpack.c.1.s8 %v19_v15  ;;  %v43_v32 = vunpack.c.2.s8 %v19_v15  ;;  %v44_v33 = vunpack.c.3.s8 %v19_v15 }
   0x8   :  { %v45_v34 = vunpack.c.0.s8 %v20_v20  ;;  %v46_v35 = vand.u32 255, %v21_v7  ;;  %v47_v36 = vand.u32 255, %v22_v8  ;;  %v48_v37 = vand.u32 255, %v23_v9 }
   0x9   :  { %v49_v38 = vand.u32 255, %v24_v11  ;;  %v50_v39 = vand.u32 255, %v25_v12  ;;  %v51_v40 = vand.u32 255, %v26_v13  ;;  %v52_v41 = vand.u32 255, %v27_v14 }
   0xa   :  { %v53_v42 = vand.u32 255, %v28_v16  ;;  %v54_v43 = vand.u32 255, %v29_v17  ;;  %v55_v44 = vand.u32 255, %v30_v18  ;;  %v56_v45 = vand.u32 255, %v31_v19 }
   0xb   :  { %v57_v46 = vand.u32 255, %v32_v21  ;;  %v58_v47 = vand.u32 255, %v33_v22  ;;  %v59_v48 = vand.u32 255, %v34_v23  ;;  %v60_v49 = vand.u32 255, %v35_v24 }
   0xc   :  { %v61_v50 = vand.u32 255, %v36_v25  ;;  %v62_v51 = vand.u32 255, %v37_v26  ;;  %v63_v52 = vand.u32 255, %v38_v27  ;;  %v64_v53 = vand.u32 255, %v39_v28 }
   0xd   :  { %v65_v54 = vand.u32 255, %v40_v29  ;;  %v66_v55 = vand.u32 255, %v41_v30  ;;  %v67_v56 = vand.u32 255, %v42_v31  ;;  %v68_v57 = vand.u32 255, %v43_v32 }
   0xe   :  { %v69_v58 = vand.u32 255, %v44_v33  ;;  %v70_v59 = vand.u32 255, %v45_v34  ;;  %v71_v60 = vcvt.s32.f32 %v46_v35  ;;  %v72_v61 = vcvt.s32.f32 %v47_v36 }
   0xf   :  { %v73_v62 = vcvt.s32.f32 %v48_v37  ;;  %v74_v63 = vcvt.s32.f32 %v49_v38  ;;  %v75_v0 = vcvt.s32.f32 %v50_v39  ;;  %v76_v1 = vcvt.s32.f32 %v51_v40 }
  0x10   :  { %v77_v2 = vcvt.s32.f32 %v52_v41  ;;  %v78_v3 = vcvt.s32.f32 %v53_v42  ;;  %v79_v4 = vcvt.s32.f32 %v54_v43  ;;  %v80_v5 = vcvt.s32.f32 %v55_v44 }
  0x11   :  { %v81_v6 = vcvt.s32.f32 %v56_v45  ;;  %v82_v7 = vcvt.s32.f32 %v57_v46  ;;  %v83_v8 = vcvt.s32.f32 %v58_v47  ;;  %v84_v9 = vcvt.s32.f32 %v59_v48 }
  0x12   :  { %v85_v10 = vcvt.s32.f32 %v60_v49  ;;  %v86_v11 = vcvt.s32.f32 %v61_v50  ;;  %v87_v12 = vcvt.s32.f32 %v62_v51  ;;  %v88_v13 = vcvt.s32.f32 %v63_v52 }
  0x13   :  { %v89_v14 = vcvt.s32.f32 %v64_v53  ;;  %v90_v15 = vcvt.s32.f32 %v65_v54  ;;  %v91_v16 = vcvt.s32.f32 %v66_v55  ;;  %v92_v18 = vcvt.s32.f32 %v67_v56 }
  0x14   :  { %v93_v19 = vcvt.s32.f32 %v68_v57  ;;  %v94_v20 = vcvt.s32.f32 %v69_v58  ;;  %v95_v21 = vcvt.s32.f32 %v70_v59 }
  0x81   :  { %v100_v17 = vpop.permute.xlu0 %99 }
  0x82   :  { %v102_v22 = vmul.f32 %v100_v17, %v71_v60  ;;  %v103_v23 = vmul.f32 %v100_v17, %v72_v61  ;;  %v104_v24 = vmul.f32 %v100_v17, %v73_v62  ;;  %v105_v25 = vmul.f32 %v100_v17, %v74_v63 }
  0x83   :  { %v106_v26 = vmul.f32 %v100_v17, %v75_v0  ;;  %v107_v27 = vmul.f32 %v100_v17, %v76_v1  ;;  %v108_v28 = vmul.f32 %v100_v17, %v77_v2  ;;  %v109_v29 = vmul.f32 %v100_v17, %v78_v3 }
  0x84   :  { %v110_v30 = vmul.f32 %v100_v17, %v79_v4  ;;  %v111_v31 = vmul.f32 %v100_v17, %v80_v5  ;;  %v112_v32 = vmul.f32 %v100_v17, %v81_v6  ;;  %v113_v33 = vmul.f32 %v100_v17, %v82_v7 }
  0x85   :  { %v114_v34 = vmul.f32 %v100_v17, %v83_v8  ;;  %v115_v35 = vmul.f32 %v100_v17, %v84_v9  ;;  %v116_v36 = vmul.f32 %v100_v17, %v85_v10  ;;  %v117_v37 = vmul.f32 %v100_v17, %v86_v11  ;;  %v131_v38 = vpop.permute.xlu0 %130 }
  0x86   :  { %v118_v39 = vmul.f32 %v100_v17, %v87_v12  ;;  %v119_v40 = vmul.f32 %v100_v17, %v88_v13  ;;  %v120_v41 = vmul.f32 %v100_v17, %v89_v14  ;;  %v121_v42 = vmul.f32 %v100_v17, %v90_v15 }
  0x87   :  { %v122_v43 = vmul.f32 %v100_v17, %v91_v16  ;;  %v123_v44 = vmul.f32 %v100_v17, %v92_v18  ;;  %v124_v45 = vmul.f32 %v100_v17, %v93_v19  ;;  %v125_v46 = vmul.f32 %v100_v17, %v94_v20 }
  0x88   :  { %v126_v47 = vmul.f32 %v100_v17, %v95_v21  ;;  %v133_v48 = vadd.f32 %v131_v38, %v102_v22  ;;  %v134_v49 = vadd.f32 %v131_v38, %v103_v23  ;;  %v135_v50 = vadd.f32 %v131_v38, %v104_v24 }
  0x89   :  { %v136_v51 = vadd.f32 %v131_v38, %v105_v25  ;;  %v137_v52 = vadd.f32 %v131_v38, %v106_v26  ;;  %v138_v53 = vadd.f32 %v131_v38, %v107_v27  ;;  %v139_v54 = vadd.f32 %v131_v38, %v108_v28 }
  0x8a   :  { %v140_v55 = vadd.f32 %v131_v38, %v109_v29  ;;  %v141_v56 = vadd.f32 %v131_v38, %v110_v30  ;;  %v142_v57 = vadd.f32 %v131_v38, %v111_v31  ;;  %v143_v58 = vadd.f32 %v131_v38, %v112_v32  ;;  %158 = vst [vmem:[%s317_s3] sm:$0x3f] %v133_v48 }
  0x8b   :  { %159 = vst [vmem:[%s317_s3 + $0x8] sm:$0x3f] %v134_v49  ;;  %160 = vst [vmem:[%s317_s3 + $0x10] sm:$0x3f] %v135_v50  ;;  %v144_v59 = vadd.f32 %v131_v38, %v113_v33  ;;  %v145_v60 = vadd.f32 %v131_v38, %v114_v34  ;;  %v146_v61 = vadd.f32 %v131_v38, %v115_v35 }
  0x8c   :  { %v147_v62 = vadd.f32 %v131_v38, %v116_v36  ;;  %161 = vst [vmem:[%s317_s3 + $0x18] sm:$0x3f] %v136_v51  ;;  %162 = vst [vmem:[%s317_s3 + $0x20] sm:$0x3f] %v137_v52  ;;  %v148_v63 = vadd.f32 %v131_v38, %v117_v37  ;;  %v149_v0 = vadd.f32 %v131_v38, %v118_v39 }
  0x8d   :  { %163 = vst [vmem:[%s317_s3 + $0x28] sm:$0x3f] %v138_v53  ;;  %164 = vst [vmem:[%s317_s3 + $0x30] sm:$0x3f] %v139_v54  ;;  %v150_v1 = vadd.f32 %v131_v38, %v119_v40  ;;  %v151_v2 = vadd.f32 %v131_v38, %v120_v41  ;;  %v152_v3 = vadd.f32 %v131_v38, %v121_v42 }
  0x8e   :  { %165 = vst [vmem:[%s317_s3 + $0x38] sm:$0x3f] %v140_v55  ;;  %166 = vst [vmem:[%s317_s3 + $0x40] sm:$0x3f] %v141_v56  ;;  %v153_v4 = vadd.f32 %v131_v38, %v122_v43  ;;  %v154_v5 = vadd.f32 %v131_v38, %v123_v44  ;;  %v155_v6 = vadd.f32 %v131_v38, %v124_v45 }
  0x8f   :  { %167 = vst [vmem:[%s317_s3 + $0x48] sm:$0x3f] %v142_v57  ;;  %168 = vst [vmem:[%s317_s3 + $0x50] sm:$0x3f] %v143_v58  ;;  %v156_v7 = vadd.f32 %v131_v38, %v125_v46  ;;  %v157_v8 = vadd.f32 %v131_v38, %v126_v47 }
  0x90   :  { %169 = vst [vmem:[%s317_s3 + $0x58] sm:$0x3f] %v144_v59  ;;  %170 = vst [vmem:[%s317_s3 + $0x60] sm:$0x3f] %v145_v60 }
  0x91   :  { %171 = vst [vmem:[%s317_s3 + $0x68] sm:$0x3f] %v146_v61  ;;  %172 = vst [vmem:[%s317_s3 + $0x70] sm:$0x3f] %v147_v62 }
  0x92   :  { %173 = vst [vmem:[%s317_s3 + $0x78] sm:$0x3f] %v148_v63  ;;  %174 = vst [vmem:[%s317_s3 + $0x80] sm:$0x3f] %v149_v0 }
  0x93   :  { %175 = vst [vmem:[%s317_s3 + $0x88] sm:$0x3f] %v150_v1  ;;  %176 = vst [vmem:[%s317_s3 + $0x90] sm:$0x3f] %v151_v2 }
  0x94   :  { %177 = vst [vmem:[%s317_s3 + $0x98] sm:$0x3f] %v152_v3  ;;  %178 = vst [vmem:[%s317_s3 + $0xa0] sm:$0x3f] %v153_v4 }
  0x95   :  { %179 = vst [vmem:[%s317_s3 + $0xa8] sm:$0x3f] %v154_v5  ;;  %180 = vst [vmem:[%s317_s3 + $0xb0] sm:$0x3f] %v155_v6 }
  0x96   :  { %181 = vst [vmem:[%s317_s3 + $0xb8] sm:$0x3f] %v156_v7  ;;  %183 = vst.msk [vmem:[%s317_s3 + $0xc0] sm:$0x3f] %vm182_vm0, %v157_v8 }

</bundles_post_ra>
